<compile_context>
chip_gen: v6e
topology: v6e:2x2x1
jax: 0.10.0
libtpu: 0.0.40
codegen_flags: <defaults>
</compile_context>

<pallas_src>
from functools import partial

import jax
import jax.numpy as jnp
from jax.experimental import pallas as pl
from jax.experimental.pallas import tpu as pltpu


def _round_up(x, m):
    return ((x + m - 1) // m) * m


def social_encoder_kernel(nodes_ref,      # (B,)            int32  SMEM (scalar prefetch)
                          self_ref,       # (1, D_pad)      f32    gathered emb[nodes[b]]
                          adjrow_ref,     # (1, N_TILE)     bf16   gathered adj[nodes[b], n-tile]
                          emb_ref,        # (N_TILE, D_pad) bf16   streamed embedding tile
                          w_self_ref,     # (D_pad, D_pad)  f32
                          w_neigh_ref,    # (D_pad, D_pad)  f32
                          bias_ref,       # (1, D_pad)      f32
                          out_ref,        # (1, D_pad)      f32
                          acc_ref,        # (1, D_pad)      f32 scratch (neighbor sum)
                          deg_ref):       # (1, 1)          f32 scratch (degree)
    n = pl.program_id(1)

    @pl.when(n == 0)
    def _():
        acc_ref[...] = jnp.zeros_like(acc_ref)
        deg_ref[...] = jnp.zeros_like(deg_ref)

    adj_row = adjrow_ref[...]                                           # exact 0/1 in bf16
    deg_ref[...] += jnp.sum(adj_row.astype(jnp.float32), axis=1, keepdims=True)
    acc_ref[...] += jnp.dot(adj_row, emb_ref[...],
                            preferred_element_type=jnp.float32)         # (1, D_pad) f32

    @pl.when(n == pl.num_programs(1) - 1)
    def _():
        inv_deg = pl.reciprocal(jnp.maximum(deg_ref[...], 1.0))          # exact EUP recip
        neigh = acc_ref[...] * inv_deg                                   # (1, D_pad) f32
        y = jnp.dot(self_ref[...], w_self_ref[...],
                    preferred_element_type=jnp.float32)
        y = y + jnp.dot(neigh, w_neigh_ref[...],
                        preferred_element_type=jnp.float32)
        y = y + bias_ref[...]
        out_ref[...] = jnp.maximum(y, 0.0).astype(out_ref.dtype)         # lane-dense store


def prepare_social_encoder_params(emb_table, adj, w, b, *,
                                  agg_dtype=jnp.bfloat16, n_tile=256):
    """One-time model prep: padding / low-precision casts hoisted out of the forward."""
    N, D = emb_table.shape
    assert adj.shape == (N, N)
    D_pad = _round_up(D, 128)
    n_tile = _round_up(min(n_tile, N), 128)
    N_pad = _round_up(N, n_tile)

    emb_f32 = emb_table.astype(jnp.float32)
    # Exact f32 self-lookup table, shaped (N, 1, D_pad) so the gathered block is (1, D_pad).
    emb_self = jnp.zeros((N, 1, D_pad), jnp.float32).at[:, 0, :D].set(emb_f32)
    # Low-precision aggregation table, zero-padded rows/lanes.
    emb_agg = jnp.zeros((N_pad, D_pad), agg_dtype).at[:N, :D].set(emb_table.astype(agg_dtype))
    # Adjacency (0/1 exact in agg_dtype), shaped (N, 1, N_pad) for per-row gathers.
    adj_agg = jnp.zeros((N, 1, N_pad), agg_dtype).at[:, 0, :N].set(adj.astype(agg_dtype))

    # Split the 2D->D linear (PyTorch (out, in) layout) into two K=D_pad contractions.
    w = w.astype(jnp.float32)
    w_self = jnp.zeros((D_pad, D_pad), jnp.float32).at[:D, :D].set(w[:, :D].T)
    w_neigh = jnp.zeros((D_pad, D_pad), jnp.float32).at[:D, :D].set(w[:, D:].T)
    bias = jnp.zeros((1, D_pad), jnp.float32).at[0, :D].set(b.astype(jnp.float32))

    return dict(emb_self=emb_self, emb_agg=emb_agg, adj_agg=adj_agg,
                w_self=w_self, w_neigh=w_neigh, bias=bias,
                embed_dim=D, n_tile=n_tile)


@partial(jax.jit, static_argnames=("embed_dim", "n_tile"))
def social_encoder_forward(nodes, emb_self, adj_agg, emb_agg, w_self, w_neigh, bias,
                           *, embed_dim, n_tile):
    """
    nodes: (B,) int32 node ids.  Returns (B, embed_dim) f32.
    """
    B = nodes.shape[0]
    N_pad, D_pad = emb_agg.shape
    n_steps = N_pad // n_tile
    nodes = nodes.astype(jnp.int32)

    grid_spec = pltpu.PrefetchScalarGridSpec(
        num_scalar_prefetch=1,
        grid=(B, n_steps),
        in_specs=[
            # emb[nodes[b]] self row (f32, exact); resident across the inner n loop.
            pl.BlockSpec((None, 1, D_pad), lambda bi, ni, nd: (nd[bi], 0, 0)),
            # adj[nodes[b], n-tile] row slice (bf16, exact 0/1).
            pl.BlockSpec((None, 1, n_tile), lambda bi, ni, nd: (nd[bi], 0, ni)),
            # Streamed embedding tile for the aggregation matmul.
            pl.BlockSpec((n_tile, D_pad), lambda bi, ni, nd: (ni, 0)),
            # Linear weights / bias (VMEM resident).
            pl.BlockSpec((D_pad, D_pad), lambda bi, ni, nd: (0, 0)),
            pl.BlockSpec((D_pad, D_pad), lambda bi, ni, nd: (0, 0)),
            pl.BlockSpec((1, D_pad), lambda bi, ni, nd: (0, 0)),
        ],
        out_specs=pl.BlockSpec((None, 1, D_pad), lambda bi, ni, nd: (bi, 0, 0)),
        scratch_shapes=[pltpu.VMEM((1, D_pad), jnp.float32),   # neighbor-sum accumulator
                        pltpu.VMEM((1, 1), jnp.float32)],      # degree accumulator
    )

    out = pl.pallas_call(
        social_encoder_kernel,
        out_shape=jax.ShapeDtypeStruct((B, 1, D_pad), jnp.float32),
        grid_spec=grid_spec,
        compiler_params=pltpu.CompilerParams(
            dimension_semantics=("parallel", "arbitrary"),
            vmem_limit_bytes=32 * 1024 * 1024,
        ),
    )(nodes, emb_self, adj_agg, emb_agg, w_self, w_neigh, bias)

    return out[:, 0, :embed_dim]


def reference_forward(nodes, emb_table, adj, w, b):
    self_feats = emb_table[nodes]
    adj_rows = adj[nodes]
    deg = jnp.maximum(adj_rows.sum(axis=1, keepdims=True), 1.0)
    neigh = (adj_rows / deg) @ emb_table
    combined = jnp.concatenate([self_feats, neigh], axis=1)
    return jax.nn.relu(combined @ w.T + b)


if __name__ == "__main__":
    key = jax.random.PRNGKey(0)
    k_emb, k_adj, k_w, k_b, k_nodes = jax.random.split(key, 5)

    B, N, D = 8, 300, 32  # batch of nodes, total nodes, embed_dim (small but tiled: N_pad=384)

    emb_table = jax.random.normal(k_emb, (N, D), dtype=jnp.float32)
    # Random sparse-ish 0/1 adjacency, no self loops.
    adj = (jax.random.uniform(k_adj, (N, N)) < 0.15).astype(jnp.float32)
    adj = adj * (1.0 - jnp.eye(N, dtype=jnp.float32))
    # Linear(2D -> D), PyTorch weight layout (out, in), uniform init like nn.Linear.
    bound = 1.0 / jnp.sqrt(2.0 * D)
    w = jax.random.uniform(k_w, (D, 2 * D), minval=-bound, maxval=bound, dtype=jnp.float32)
    b = jax.random.uniform(k_b, (D,), minval=-bound, maxval=bound, dtype=jnp.float32)
    nodes = jax.random.randint(k_nodes, (B,), 0, N, dtype=jnp.int32)

    # One-time prep (padding + low-precision casts), then the fused Pallas forward.
    params = prepare_social_encoder_params(emb_table, adj, w, b, n_tile=128)
    out = social_encoder_forward(
        nodes,
        params["emb_self"], params["adj_agg"], params["emb_agg"],
        params["w_self"], params["w_neigh"], params["bias"],
        embed_dim=params["embed_dim"], n_tile=params["n_tile"],
    )
    out = jax.block_until_ready(out)

    ref = reference_forward(nodes, emb_table, adj, w, b)
    assert out.shape == (B, D)
    # self path and linear are exact f32; only the neighbor mean uses bf16 embeddings.
    assert jnp.allclose(out, ref, atol=2e-2, rtol=2e-2)

    print("KERNEL_OK")
</pallas_src>

<mosaic_0001>
module attributes {stable_mosaic.version = 11 : i64} {
  func.func @social_encoder_kernel(%arg0: i32, %arg1: i32, %arg2: memref<8xi32, #tpu.memory_space<smem>>, %arg3: memref<1x1x128xf32, #tpu.memory_space<vmem>>, %arg4: memref<1x1x128xbf16, #tpu.memory_space<vmem>>, %arg5: memref<128x128xbf16, #tpu.memory_space<vmem>>, %arg6: memref<128x128xf32, #tpu.memory_space<vmem>>, %arg7: memref<128x128xf32, #tpu.memory_space<vmem>>, %arg8: memref<1x128xf32, #tpu.memory_space<vmem>>, %arg9: memref<1x1x128xf32, #tpu.memory_space<vmem>>, %arg10: memref<1x128xf32, #tpu.memory_space<vmem>>, %arg11: memref<1x1xf32, #tpu.memory_space<vmem>>) attributes {dimension_semantics = [#tpu.dimension_semantics<parallel>, #tpu.dimension_semantics<arbitrary>], iteration_bounds = array<i64: 8, 3>, scalar_prefetch = 1 : i64, scratch_operands = 2 : i64, tpu.core_type = #tpu.core_type<tc>, window_params = [{transform_indices = @transform_0, window_bounds = array<i64: 1, 1, 128>}, {transform_indices = @transform_1, window_bounds = array<i64: 1, 1, 128>}, {transform_indices = @transform_2, window_bounds = array<i64: 128, 128>}, {pipeline_mode = #tpu.pipeline_mode<synchronous>, transform_indices = @transform_3, window_bounds = array<i64: 128, 128>}, {pipeline_mode = #tpu.pipeline_mode<synchronous>, transform_indices = @transform_4, window_bounds = array<i64: 128, 128>}, {pipeline_mode = #tpu.pipeline_mode<synchronous>, transform_indices = @transform_5, window_bounds = array<i64: 1, 128>}, {transform_indices = @transform_6, window_bounds = array<i64: 1, 1, 128>}]} {
    %c0_i32 = arith.constant 0 : i32
    %0 = arith.cmpi eq, %arg1, %c0_i32 : i32
    %1 = arith.extui %0 : i1 to i32
    %c0_i32_0 = arith.constant 0 : i32
    %2 = arith.cmpi ne, %1, %c0_i32_0 : i32
    scf.if %2 {
      %cst_15 = arith.constant 0.000000e+00 : f32
      %19 = vector.broadcast %cst_15 : f32 to vector<1x128xf32>
      %c0_16 = arith.constant 0 : index
      %c0_17 = arith.constant 0 : index
      %20 = vector.load %arg10[%c0_16, %c0_17] : memref<1x128xf32, #tpu.memory_space<vmem>>, vector<1x128xf32>
      tpu.vector_store %arg10[%c0_16, %c0_17], %19 {strides = array<i32>} : memref<1x128xf32, #tpu.memory_space<vmem>>, vector<1x128xf32>,
      %cst_18 = arith.constant 0.000000e+00 : f32
      %21 = vector.broadcast %cst_18 : f32 to vector<1x1xf32>
      %c0_19 = arith.constant 0 : index
      %c0_20 = arith.constant 0 : index
      %22 = vector.load %arg11[%c0_19, %c0_20] : memref<1x1xf32, #tpu.memory_space<vmem>>, vector<1x1xf32>
      tpu.vector_store %arg11[%c0_19, %c0_20], %21 {strides = array<i32>} : memref<1x1xf32, #tpu.memory_space<vmem>>, vector<1x1xf32>,
    } else {
    }
    %c0 = arith.constant 0 : index
    %c0_1 = arith.constant 0 : index
    %c0_2 = arith.constant 0 : index
    %3 = vector.load %arg4[%c0, %c0_1, %c0_2] : memref<1x1x128xbf16, #tpu.memory_space<vmem>>, vector<1x1x128xbf16>
    %4 = vector.shape_cast %3 : vector<1x1x128xbf16> to vector<1x128xbf16>
    %c0_3 = arith.constant 0 : index
    %c0_4 = arith.constant 0 : index
    %5 = vector.load %arg11[%c0_3, %c0_4] : memref<1x1xf32, #tpu.memory_space<vmem>>, vector<1x1xf32>
    %6 = arith.extf %4 : vector<1x128xbf16> to vector<1x128xf32>
    %cst = arith.constant dense<0.000000e+00> : vector<1xf32>
    %7 = vector.multi_reduction <add>, %6, %cst [1] : vector<1x128xf32> to vector<1xf32>
    %8 = vector.shape_cast %7 : vector<1xf32> to vector<1x1xf32>
    %9 = arith.addf %5, %8 : vector<1x1xf32>
    %c0_5 = arith.constant 0 : index
    %c0_6 = arith.constant 0 : index
    %10 = vector.load %arg11[%c0_5, %c0_6] : memref<1x1xf32, #tpu.memory_space<vmem>>, vector<1x1xf32>
    tpu.vector_store %arg11[%c0_5, %c0_6], %9 {strides = array<i32>} : memref<1x1xf32, #tpu.memory_space<vmem>>, vector<1x1xf32>,
    %c0_7 = arith.constant 0 : index
    %c0_8 = arith.constant 0 : index
    %11 = vector.load %arg10[%c0_7, %c0_8] : memref<1x128xf32, #tpu.memory_space<vmem>>, vector<1x128xf32>
    %c0_9 = arith.constant 0 : index
    %c0_10 = arith.constant 0 : index
    %12 = vector.load %arg5[%c0_9, %c0_10] : memref<128x128xbf16, #tpu.memory_space<vmem>>, vector<128x128xbf16>
    %cst_11 = arith.constant dense<0.000000e+00> : vector<1x128xf32>
    %13 = tpu.matmul %4, %12, %cst_11 {dimension_numbers = #tpu.dot_dimension_numbers<[1], [0], [0], [1], [0, 0, 1, 1], [], []>} : vector<1x128xbf16>, vector<128x128xbf16>, vector<1x128xf32> -> vector<1x128xf32>
    %14 = arith.addf %11, %13 : vector<1x128xf32>
    %c0_12 = arith.constant 0 : index
    %c0_13 = arith.constant 0 : index
    %15 = vector.load %arg10[%c0_12, %c0_13] : memref<1x128xf32, #tpu.memory_space<vmem>>, vector<1x128xf32>
    tpu.vector_store %arg10[%c0_12, %c0_13], %14 {strides = array<i32>} : memref<1x128xf32, #tpu.memory_space<vmem>>, vector<1x128xf32>,
    %c2_i32 = arith.constant 2 : i32
    %16 = arith.cmpi eq, %arg1, %c2_i32 : i32
    %17 = arith.extui %16 : i1 to i32
    %c0_i32_14 = arith.constant 0 : i32
    %18 = arith.cmpi ne, %17, %c0_i32_14 : i32
    scf.if %18 {
      %c0_15 = arith.constant 0 : index
      %c0_16 = arith.constant 0 : index
      %19 = vector.load %arg11[%c0_15, %c0_16] : memref<1x1xf32, #tpu.memory_space<vmem>>, vector<1x1xf32>
      %cst_17 = arith.constant 1.000000e+00 : f32
      %20 = vector.broadcast %cst_17 : f32 to vector<1x1xf32>
      %21 = arith.maximumf %19, %20 : vector<1x1xf32>
      %22 = tpu.reciprocal %21 : vector<1x1xf32> -> vector<1x1xf32>
      %c0_18 = arith.constant 0 : index
      %c0_19 = arith.constant 0 : index
      %23 = vector.load %arg10[%c0_18, %c0_19] : memref<1x128xf32, #tpu.memory_space<vmem>>, vector<1x128xf32>
      %24 = vector.broadcast %22 : vector<1x1xf32> to vector<1x128xf32>
      %25 = arith.mulf %23, %24 : vector<1x128xf32>
      %c0_20 = arith.constant 0 : index
      %c0_21 = arith.constant 0 : index
      %c0_22 = arith.constant 0 : index
      %26 = vector.load %arg3[%c0_20, %c0_21, %c0_22] : memref<1x1x128xf32, #tpu.memory_space<vmem>>, vector<1x1x128xf32>
      %27 = vector.shape_cast %26 : vector<1x1x128xf32> to vector<1x128xf32>
      %c0_23 = arith.constant 0 : index
      %c0_24 = arith.constant 0 : index
      %28 = vector.load %arg6[%c0_23, %c0_24] : memref<128x128xf32, #tpu.memory_space<vmem>>, vector<128x128xf32>
      %cst_25 = arith.constant dense<0.000000e+00> : vector<1x128xf32>
      %29 = tpu.matmul %27, %28, %cst_25 {dimension_numbers = #tpu.dot_dimension_numbers<[1], [0], [0], [1], [0, 0, 1, 1], [], []>} : vector<1x128xf32>, vector<128x128xf32>, vector<1x128xf32> -> vector<1x128xf32>
      %c0_26 = arith.constant 0 : index
      %c0_27 = arith.constant 0 : index
      %30 = vector.load %arg7[%c0_26, %c0_27] : memref<128x128xf32, #tpu.memory_space<vmem>>, vector<128x128xf32>
      %cst_28 = arith.constant dense<0.000000e+00> : vector<1x128xf32>
      %31 = tpu.matmul %25, %30, %cst_28 {dimension_numbers = #tpu.dot_dimension_numbers<[1], [0], [0], [1], [0, 0, 1, 1], [], []>} : vector<1x128xf32>, vector<128x128xf32>, vector<1x128xf32> -> vector<1x128xf32>
      %32 = arith.addf %29, %31 : vector<1x128xf32>
      %c0_29 = arith.constant 0 : index
      %c0_30 = arith.constant 0 : index
      %33 = vector.load %arg8[%c0_29, %c0_30] : memref<1x128xf32, #tpu.memory_space<vmem>>, vector<1x128xf32>
      %34 = arith.addf %32, %33 : vector<1x128xf32>
      %cst_31 = arith.constant 0.000000e+00 : f32
      %35 = vector.broadcast %cst_31 : f32 to vector<1x128xf32>
      %36 = arith.maximumf %34, %35 : vector<1x128xf32>
      %c0_32 = arith.constant 0 : index
      %c0_33 = arith.constant 0 : index
      %c0_34 = arith.constant 0 : index
      %37 = vector.load %arg9[%c0_32, %c0_33, %c0_34] : memref<1x1x128xf32, #tpu.memory_space<vmem>>, vector<1x1x128xf32>
      %38 = vector.shape_cast %37 : vector<1x1x128xf32> to vector<1x128xf32>
      %39 = vector.shape_cast %36 : vector<1x128xf32> to vector<1x1x128xf32>
      tpu.vector_store %arg9[%c0_32, %c0_33, %c0_34], %39 {strides = array<i32>} : memref<1x1x128xf32, #tpu.memory_space<vmem>>, vector<1x1x128xf32>,
    } else {
    }
    return
  }
  func.func @transform_0(%arg0: i32, %arg1: i32, %arg2: memref<8xi32, #tpu.memory_space<smem>>) -> (i32, i32, i32) {
    %0 = arith.index_cast %arg0 : i32 to index
    %1 = memref.load %arg2[%0] : memref<8xi32, #tpu.memory_space<smem>>
    %c0_i32 = arith.constant 0 : i32
    %c0_i32_0 = arith.constant 0 : i32
    %c0_i32_1 = arith.constant 0 : i32
    return %1, %c0_i32, %c0_i32_0 : i32, i32, i32
  }
  func.func @transform_1(%arg0: i32, %arg1: i32, %arg2: memref<8xi32, #tpu.memory_space<smem>>) -> (i32, i32, i32) {
    %0 = arith.index_cast %arg0 : i32 to index
    %1 = memref.load %arg2[%0] : memref<8xi32, #tpu.memory_space<smem>>
    %c0_i32 = arith.constant 0 : i32
    %c0_i32_0 = arith.constant 0 : i32
    return %1, %c0_i32, %arg1 : i32, i32, i32
  }
  func.func @transform_2(%arg0: i32, %arg1: i32, %arg2: memref<8xi32, #tpu.memory_space<smem>>) -> (i32, i32) {
    %c0_i32 = arith.constant 0 : i32
    %c0_i32_0 = arith.constant 0 : i32
    return %arg1, %c0_i32 : i32, i32
  }
  func.func @transform_3(%arg0: i32, %arg1: i32, %arg2: memref<8xi32, #tpu.memory_space<smem>>) -> (i32, i32) {
    %c0_i32 = arith.constant 0 : i32
    %c0_i32_0 = arith.constant 0 : i32
    %c0_i32_1 = arith.constant 0 : i32
    return %c0_i32, %c0_i32_0 : i32, i32
  }
  func.func @transform_4(%arg0: i32, %arg1: i32, %arg2: memref<8xi32, #tpu.memory_space<smem>>) -> (i32, i32) {
    %c0_i32 = arith.constant 0 : i32
    %c0_i32_0 = arith.constant 0 : i32
    %c0_i32_1 = arith.constant 0 : i32
    return %c0_i32, %c0_i32_0 : i32, i32
  }
  func.func @transform_5(%arg0: i32, %arg1: i32, %arg2: memref<8xi32, #tpu.memory_space<smem>>) -> (i32, i32) {
    %c0_i32 = arith.constant 0 : i32
    %c0_i32_0 = arith.constant 0 : i32
    %c0_i32_1 = arith.constant 0 : i32
    return %c0_i32, %c0_i32_0 : i32, i32
  }
  func.func @transform_6(%arg0: i32, %arg1: i32, %arg2: memref<8xi32, #tpu.memory_space<smem>>) -> (i32, i32, i32) {
    %c0_i32 = arith.constant 0 : i32
    %c0_i32_0 = arith.constant 0 : i32
    %c0_i32_1 = arith.constant 0 : i32
    return %arg0, %c0_i32, %c0_i32_0 : i32, i32, i32
  }
}

</mosaic_0001>

<bundles_post_ra>
// kernel: social_encoder_forward.1
= control target key start
LH: loop header
LB: loop body
LE: loop exit
PB: predicated region body
PF: predicated region fallthrough
CT: control target
= control target key end

     0   :  { %s1440_s0 = inlined_call_operand.vmem [shape: s32[8], index: 0, kind: input, shape index: {}]   ;;  %s1441_s1 = inlined_call_operand.vmem [shape: f32[300,1,128], index: 1, kind: input, shape index: {}]   ;;  %s1442_s2 = inlined_call_operand.vmem [shape: bf16[300,1,384], index: 2, kind: input, shape index: {}]   ;;  %s1443_s3 = inlined_call_operand.vmem [shape: bf16[384,128], index: 3, kind: input, shape index: {}]   ;;  %s1444_s4 = inlined_call_operand.vmem [shape: f32[128,128], index: 4, kind: input, shape index: {}]   ;;  %s1445_s5 = inlined_call_operand.vmem [shape: f32[128,128], index: 5, kind: input, shape index: {}]   ;;  %s1446_s6 = inlined_call_operand.vmem [shape: f32[1,128], index: 6, kind: input, shape index: {}]   ;;  %s1447_s7 = inlined_call_operand.hbm [shape: f32[8,1,128], index: 7, kind: output, shape index: {}]  }
   0x1   :  { %s12_s26 = sshll.u32 %s1440_s0, 4  ;;  %s13_s26 = int_to_ptr.vmem [resolvable:$true] %s12_s26 }
   0x2   :  { %s992_s27 = scalar_lea.vmem %s13_s26, 16  ;;  %p997_p1 = scmp.lt.s32.totalorder %s13_s26, %s13_s26 }
   0x3   :  { %p993_p0 = scmp.ne.s32.totalorder %s13_s26, %s992_s27  ;;  %p998_p2 = scmp.lt.s32.totalorder %s992_s27, %s992_s27 }
   0x5   :  { %p999_p3 = por %p998_p2, %p997_p1 }
   0x7   :  { %p1000_p4 = pnand %p999_p3, %p993_p0 }
   0x9   :  { %1003 = shalt.err (!%p1000_p4)  }
   0xa   :  { %s1100_s28 = smov [#allocation5]  }
   0xb   :  { %15 = dma.vmem_to_smem %s13_s26, 16, %s1100_s28, [#allocation4] }
   0xc   :  { %1062 = dma.done.wait [#allocation4], 16 }
   0xd   :  { %1063 = vsyncadd [#allocation4], 4294967280 }
   0xe   :  { %17 = sfence }
   0xf   :  { %18 = vsyncpa [#allocation7], 0 }
  0x10   :  { %20 = vsyncpa [#allocation7 + $0x1], 0  ;;  %s1151_s29 = smov 0   ;;  %s1153_s30 = smov 0  }
  0x11   :  { %s1155_s0 = smov 0   ;;  %s1157_s8 = smov 0  }
  0x12   :  { %s1159_s9 = smov 0   ;;  %s1161_s10 = smov 0  }
  0x13   :  { %s1163_s11 = smov 0   ;;  %s1165_s12 = smov 0  }
  0x14 LB: > { %1452 = sst [smem:[#allocation10_spill]] %s1078_s0  ;;  %s749_s13 = sadd.s32 4294967295, %s1098_s12   ;;  %s1098_s12 = sphi %s1165_s12, %s26_s12   ;;  %s1094_s11 = sphi %s1163_s11, %s1467_s11   ;;  %s1090_s10 = sphi %s1161_s10, %s1466_s10   ;;  %s1086_s9 = sphi %s1159_s9, %s1465_s9   ;;  %s1082_s8 = sphi %s1157_s8, %s1470_s8   ;;  %s1078_s0 = sphi %s1155_s0, %s1463_s0   ;;  %s1074_s30 = sphi %s1153_s30, %s1469_s30   ;;  %s1070_s29 = sphi %s1151_s29, %s1468_s29  }
  0x15   : > { %1453 = sst [smem:[#allocation11_spill]] %s1090_s10  ;;  %s750_s14 = sadd.s32 4294967294, %s1098_s12  }
  0x16   : > { %1454 = sst [smem:[#allocation12_spill]] %s1094_s11  ;;  %s35_s15 = sadd.s32 1, %s1090_s10 }
  0x17   : > { %p36_p5 = scmp.ge.s32.totalorder %s35_s15, 3  ;;  %s38_s16 = sadd.s32 1, %s1094_s11 }
  0x18   : > { %p202_p6 = scmp.ne.s32.totalorder %s1078_s0, %s1074_s30  ;;  %p203_p7 = scmp.eq.s32.totalorder %s749_s13, 23 }
  0x19   : > { %s1472_s15 = smov (%p36_p5, %s35_s15), 0  ;;  %s1474_s16 = smov (!%p36_p5, %s38_s16), %s1094_s11 }
  0x1a   : > { %1455 = sst [smem:[#allocation13_spill]] %s1472_s15  ;;  %p1200_p8 = por %p203_p7, %p202_p6 }
  0x1b   : > { %p208_p9 = scmp.ne.s32.totalorder %s1074_s30, %s1070_s29  ;;  %p40_p10 = scmp.ge.s32.totalorder %s1474_s16, 8 }
  0x1c   : > { %p209_p11 = scmp.eq.s32.totalorder %s750_s14, 23  ;;  %p753_p12 = scmp.ge.s32.totalorder %s1098_s12, 1 }
  0x1d   : > { %p265_p13 = scmp.lt.s32.totalorder %s1098_s12, 25  ;;  %s1476_s16 = smov (%p40_p10, %s1474_s16), 0 }
  0x1e   : > { %1457 = sst [smem:[#allocation14_spill]] %s1476_s16  ;;  %p1210_p0 = por %p209_p11, %p208_p9 }
  0x1f   : > { %p266_p1 = pnand %p753_p12, %p265_p13  ;;  %s189_s19 = ssub.s32 %s1094_s11, %s1476_s16 }
  0x20   : > { %s192_s20 = sadd.s32 1, %s1078_s0  ;;  %p190_p2 = scmp.eq.s32.totalorder %s189_s19, 0 }
  0x21   : > { %269 = sbr.rel (%p266_p1) target bundleno = 653 (0x28d), region = 44  ;;  %s306_s23 = sld [smem:[#allocation5 + %s1086_s9]] (!%p266_p1) }
  0x22   : > { %s1218_s21 = scalar_select %p190_p2, %s1078_s0, %s192_s20  }
  0x23   : > { %s311_s24 = sld [smem:[#allocation5 + %s1086_s9]] (!%p266_p1)  ;;  %p314_p3 = scmp.lt.s32.totalorder (!%p266_p1), %s1082_s8, 2 }
  0x24   : > { %1459 = sst [smem:[#allocation15_spill]] %s1218_s21  ;;  %s754_s25 = sshll.u32 (!%p266_p1), %s1082_s8, 4 }
  0x25   : > { %p321_p4 = scmp.lt.s32.totalorder (!%p266_p1), %s754_s25, 47  ;;  %p756_p7 = scmp.ne.s32.totalorder (!%p266_p1), %s1082_s8, 0 }
  0x26   : > { %s315_s26 = scalar_select %p314_p3, %s1082_s8, 2 }
  0x27   : > { %s1478_s25 = smov (!%p321_p4, %s754_s25), 47  ;;  %p307_p5 = scmp.lt.s32.totalorder %s306_s23, 299 }
  0x28   : > { %s755_s27 = sshll.u32 %s1478_s25, 2  ;;  %s1460_s25 = sand.u32 1, %s1074_s30  }
  0x29   : > { %p312_p6 = scmp.lt.s32.totalorder %s311_s24, 299  ;;  %s1480_s23 = smov (!%p307_p5, %s306_s23), 299 }
  0x2a   : > { %s309_s14 = scalar_lea.vmem %s1441_s1, %s1480_s23  ;;  %s1235_s22 = scalar_lea.vmem %s1443_s3, %s755_s27 }
  0x2b   : > { %s1482_s24 = smov (!%p312_p6, %s311_s24), 299  ;;  %s1242_s0 = scalar_lea.vmem [#allocation6], %s1460_s25 }
  0x2c   : > { %s902_s16 = smul.u32 3, %s1482_s24 }
  0x2d   : > { %330 = sbr.rel (%p756_p7) target bundleno = 52 (0x34), region = 48 }
  0x2e   : > { %s317_s15 = sadd.s32 %s902_s16, %s315_s26 }
  0x2f   : > { %s318_s21 = scalar_lea.vmem %s1442_s2, %s317_s15 }
  0x32   : > { %vm332_vm0 = vcmask 0   ;;  %v1101_v0 = vmov 0.0  }
  0x33   : > { %331 = vst [vmem:[#allocation2] sm:$0x1] %v1101_v0  ;;  %333 = vst.msk [vmem:[#allocation3] sm:$0x1] %vm332_vm0, %v1101_v0 }
  0x34 PF: > { %v981_v1 = vld [vmem:[%s1235_s22 + $0x38] sm:$0xff]   ;;  %v1102_v2 = vmov 0.0   ;;  %v982_v3 = vld [vmem:[%s1235_s22 + $0x30] sm:$0xff]   ;;  %vm1103_vm1 = vmmov 0   ;;  %v983_v4 = vld [vmem:[%s1235_s22 + $0x28] sm:$0xff]   ;;  %vm337_vm2 = vcmask 1040384  }
  0x35   : > { %812 = vmatprep.subr.bf16.mxu0 %v1102_v2  ;;  %828 = vmatprep.mubr.msk.bf16.mxu0 %vm1103_vm1, %v1102_v2  ;;  %v334_v5 = vld [vmem:[%s318_s21] sm:$0x1]  ;;  %v985_v9 = vld [vmem:[%s1235_s22 + $0x18] sm:$0xff]   ;;  %v986_v10 = vld [vmem:[%s1235_s22 + $0x10] sm:$0xff]   ;;  %vm342_vm3 = vcmask 0   ;;  %p765_p9 = scmp.ne.s32.totalorder %s1082_s8, 2 }
  0x36   : > { %813 = vmatpush3.bf16.msra.mxu0 %v981_v1  ;;  %v336_v6 = vunpack.c.l.bf16 %v334_v5  ;;  %v984_v7 = vld [vmem:[%s1235_s22 + $0x20] sm:$0xff]   ;;  %v987_v11 = vld [vmem:[%s1235_s22 + $0x8] sm:$0xff]  }
  0x37   : > { %814 = vmatprep.subr.bf16.mxu0 %v1102_v2  ;;  %v988_v12 = vld [vmem:[%s1235_s22] sm:$0xff]  }
  0x38   : > { %v338_v8 = vsel %vm337_vm2, %v336_v6, 0.0 }
  0x39   : > { %339 = vadd.xlane.f32.xlu0 %v338_v8 }
  0x3a   : > { %815 = vmatpush3.bf16.msra.mxu0 %v982_v3  ;;  %v335_v13 = vld [vmem:[#allocation3] sm:$0x1]  ;;  %v344_v16 = vld [vmem:[#allocation2] sm:$0x1] }
  0x3b   : > { %816 = vmatprep.subr.bf16.mxu0 %v1102_v2 }
  0x3e   : > { %817 = vmatpush3.bf16.msra.mxu0 %v983_v4 }
  0x3f   : > { %818 = vmatprep.subr.bf16.mxu0 %v1102_v2 }
  0x42   : > { %819 = vmatpush3.bf16.msra.mxu0 %v984_v7 }
  0x43   : > { %820 = vmatprep.subr.bf16.mxu0 %v1102_v2 }
  0x46   : > { %821 = vmatpush3.bf16.msra.mxu0 %v985_v9 }
  0x47   : > { %822 = vmatprep.subr.bf16.mxu0 %v1102_v2 }
  0x4a   : > { %823 = vmatpush3.bf16.msra.mxu0 %v986_v10 }
  0x4b   : > { %824 = vmatprep.subr.bf16.mxu0 %v1102_v2 }
  0x4e   : > { %825 = vmatpush3.bf16.msra.mxu0 %v987_v11 }
  0x4f   : > { %826 = vmatprep.subr.bf16.mxu0 %v1102_v2 }
  0x52   : > { %827 = vmatpush3.bf16.msra.mxu0 %v988_v12 }
  0x55   : > { %829 = vmatmul.mubr.bf16.vlgmr.msra.gmra.mxu0 %v334_v5 }
  0xc2   : > { %v340_v14 = vpop.xlane.xlu0 %339 }
  0xc3   : > { %v341_v15 = vadd.f32 %v340_v14, %v335_v13 }
  0xc5   : > { %343 = vst.msk [vmem:[#allocation3] sm:$0x1] %vm342_vm3, %v341_v15 }
 0x115   : > { %v443_v17 = vpop.f32.mrf.mxu0 }
 0x116   : > { %v449_v18 = vadd.f32 %v443_v17, %v344_v16 }
 0x117   : > { %v830_v19 = vpop.f32.mrf.mxu0  ;;  %454 = sbr.rel (%p765_p9) target bundleno = 629 (0x275), region = 52 }
 0x118   : > { %450 = vst [vmem:[#allocation2] sm:$0x1] %v449_v18 }
 0x119   : > { %v446_v20 = vpop.f32.mrf.mxu0 }
 0x11b   : > { %v831_v21 = vpop.f32.mrf.mxu0 }
 0x11c   : > { %v455_v22 = vld [vmem:[#allocation3] sm:$0x1]  ;;  %v485_v23 = vld [vmem:[%s1444_s4 + $0x78] sm:$0xff]  ;;  %v1104_v25 = vmov 0   ;;  %v1105_v27 = vmov 0.0   ;;  %v484_v28 = vld [vmem:[%s1444_s4 + $0x70] sm:$0xff]  ;;  %v464_v60 = vlaneseq }
 0x11d   : > { %v501_v24 = vld [vmem:[%s1445_s5 + $0x78] sm:$0xff]  ;;  %989 = vset.pattern.permute.xlu0 %v1104_v25  ;;  %v456_v26 = vmax.f32 %v455_v22, 1.0  ;;  %867 = vmatprep.subr.mxu1 %v1105_v27  ;;  %v500_v29 = vld [vmem:[%s1445_s5 + $0x70] sm:$0xff]  ;;  %v483_v30 = vld [vmem:[%s1444_s4 + $0x68] sm:$0xff]  ;;  %vm1106_vm4 = vmmov 0  }
 0x11e   : > { %868 = vmatpush3.msra.mxu1 %v485_v23  ;;  %832 = vmatprep.subr.mxu0 %v1105_v27  ;;  %v499_v31 = vld [vmem:[%s1445_s5 + $0x68] sm:$0xff]  ;;  %v482_v32 = vld [vmem:[%s1444_s4 + $0x60] sm:$0xff]  ;;  %v481_v34 = vld [vmem:[%s1444_s4 + $0x58] sm:$0xff]  ;;  %v465_v61 = vshrl.u32 %v464_v60, 7 }
 0x11f   : > { %990 = vrcp.f32 %v456_v26  ;;  %869 = vmatprep.subr.mxu1 %v1105_v27  ;;  %833 = vmatpush3.msra.mxu0 %v501_v24  ;;  %v498_v33 = vld [vmem:[%s1445_s5 + $0x60] sm:$0xff]  ;;  %v497_v35 = vld [vmem:[%s1445_s5 + $0x58] sm:$0xff]  ;;  %v480_v36 = vld [vmem:[%s1444_s4 + $0x50] sm:$0xff] }
 0x120   : > { %870 = vmatpush3.msra.mxu1 %v484_v28  ;;  %834 = vmatprep.subr.mxu0 %v1105_v27  ;;  %v496_v37 = vld [vmem:[%s1445_s5 + $0x50] sm:$0xff]  ;;  %v479_v38 = vld [vmem:[%s1444_s4 + $0x48] sm:$0xff]  ;;  %v478_v40 = vld [vmem:[%s1444_s4 + $0x40] sm:$0xff]  ;;  %v466_v62 = vsub.s32 0, %v465_v61 }
 0x121   : > { %871 = vmatprep.subr.mxu1 %v1105_v27  ;;  %835 = vmatpush3.msra.mxu0 %v500_v29  ;;  %v495_v39 = vld [vmem:[%s1445_s5 + $0x48] sm:$0xff]  ;;  %v494_v41 = vld [vmem:[%s1445_s5 + $0x40] sm:$0xff]  ;;  %v477_v42 = vld [vmem:[%s1444_s4 + $0x38] sm:$0xff] }
 0x122   : > { %872 = vmatpush3.msra.mxu1 %v483_v30  ;;  %836 = vmatprep.subr.mxu0 %v1105_v27  ;;  %v493_v44 = vld [vmem:[%s1445_s5 + $0x38] sm:$0xff]  ;;  %v476_v45 = vld [vmem:[%s1444_s4 + $0x30] sm:$0xff]  ;;  %v475_v47 = vld [vmem:[%s1444_s4 + $0x28] sm:$0xff] }
 0x123   : > { %873 = vmatprep.subr.mxu1 %v1105_v27  ;;  %837 = vmatpush3.msra.mxu0 %v499_v31  ;;  %v492_v46 = vld [vmem:[%s1445_s5 + $0x30] sm:$0xff]  ;;  %v491_v48 = vld [vmem:[%s1445_s5 + $0x28] sm:$0xff]  ;;  %v474_v49 = vld [vmem:[%s1444_s4 + $0x20] sm:$0xff] }
 0x124   : > { %874 = vmatpush3.msra.mxu1 %v482_v32  ;;  %838 = vmatprep.subr.mxu0 %v1105_v27  ;;  %v490_v50 = vld [vmem:[%s1445_s5 + $0x20] sm:$0xff]  ;;  %v473_v51 = vld [vmem:[%s1444_s4 + $0x18] sm:$0xff]  ;;  %v472_v53 = vld [vmem:[%s1444_s4 + $0x10] sm:$0xff] }
 0x125   : > { %875 = vmatprep.subr.mxu1 %v1105_v27  ;;  %839 = vmatpush3.msra.mxu0 %v498_v33  ;;  %v489_v52 = vld [vmem:[%s1445_s5 + $0x18] sm:$0xff]  ;;  %v488_v54 = vld [vmem:[%s1445_s5 + $0x10] sm:$0xff]  ;;  %v471_v55 = vld [vmem:[%s1444_s4 + $0x8] sm:$0xff] }
 0x126   : > { %876 = vmatpush3.msra.mxu1 %v481_v34  ;;  %840 = vmatprep.subr.mxu0 %v1105_v27  ;;  %v487_v56 = vld [vmem:[%s1445_s5 + $0x8] sm:$0xff]  ;;  %v470_v57 = vld [vmem:[%s1444_s4] sm:$0xff] }
 0x127   : > { %877 = vmatprep.subr.mxu1 %v1105_v27  ;;  %841 = vmatpush3.msra.mxu0 %v497_v35  ;;  %v469_v58 = vld [vmem:[%s309_s14] sm:$0x1] }
 0x128   : > { %878 = vmatpush3.msra.mxu1 %v480_v36  ;;  %842 = vmatprep.subr.mxu0 %v1105_v27  ;;  %v486_v59 = vld [vmem:[%s1445_s5] sm:$0xff] }
 0x129   : > { %879 = vmatprep.subr.mxu1 %v1105_v27  ;;  %843 = vmatpush3.msra.mxu0 %v496_v37  ;;  %v458_v63 = vld [vmem:[#allocation2] sm:$0x1] }
 0x12a   : > { %880 = vmatpush3.msra.mxu1 %v479_v38  ;;  %844 = vmatprep.subr.mxu0 %v1105_v27  ;;  %v642_v6 = vld [vmem:[%s1446_s6] sm:$0x1] }
 0x12b   : > { %881 = vmatprep.subr.mxu1 %v1105_v27  ;;  %845 = vmatpush3.msra.mxu0 %v495_v39 }
 0x12c   : > { %v991_v43 = vpop.eup %990  ;;  %882 = vmatpush3.msra.mxu1 %v478_v40  ;;  %846 = vmatprep.subr.mxu0 %v1105_v27 }
 0x12d   : > { %461 = vperm.xlu0 %989, %v991_v43   ;;  %883 = vmatprep.subr.mxu1 %v1105_v27 }
 0x12e   : > { %847 = vmatpush3.msra.mxu0 %v494_v41  ;;  %884 = vmatpush3.msra.mxu1 %v477_v42 }
 0x12f   : > { %848 = vmatprep.subr.mxu0 %v1105_v27  ;;  %885 = vmatprep.subr.mxu1 %v1105_v27 }
 0x130   : > { %849 = vmatpush3.msra.mxu0 %v493_v44  ;;  %886 = vmatpush3.msra.mxu1 %v476_v45 }
 0x131   : > { %850 = vmatprep.subr.mxu0 %v1105_v27  ;;  %887 = vmatprep.subr.mxu1 %v1105_v27 }
 0x132   : > { %851 = vmatpush3.msra.mxu0 %v492_v46  ;;  %888 = vmatpush3.msra.mxu1 %v475_v47 }
 0x133   : > { %852 = vmatprep.subr.mxu0 %v1105_v27  ;;  %889 = vmatprep.subr.mxu1 %v1105_v27 }
 0x134   : > { %853 = vmatpush3.msra.mxu0 %v491_v48  ;;  %890 = vmatpush3.msra.mxu1 %v474_v49 }
 0x135   : > { %854 = vmatprep.subr.mxu0 %v1105_v27  ;;  %891 = vmatprep.subr.mxu1 %v1105_v27 }
 0x136   : > { %855 = vmatpush3.msra.mxu0 %v490_v50  ;;  %892 = vmatpush3.msra.mxu1 %v473_v51 }
 0x137   : > { %856 = vmatprep.subr.mxu0 %v1105_v27  ;;  %893 = vmatprep.subr.mxu1 %v1105_v27 }
 0x138   : > { %857 = vmatpush3.msra.mxu0 %v489_v52  ;;  %894 = vmatpush3.msra.mxu1 %v472_v53 }
 0x139   : > { %858 = vmatprep.subr.mxu0 %v1105_v27  ;;  %895 = vmatprep.subr.mxu1 %v1105_v27 }
 0x13a   : > { %859 = vmatpush3.msra.mxu0 %v488_v54  ;;  %896 = vmatpush3.msra.mxu1 %v471_v55 }
 0x13b   : > { %860 = vmatprep.subr.mxu0 %v1105_v27  ;;  %897 = vmatprep.subr.mxu1 %v1105_v27 }
 0x13c   : > { %861 = vmatpush3.msra.mxu0 %v487_v56  ;;  %898 = vmatpush3.msra.mxu1 %v470_v57 }
 0x13d   : > { %899 = vmatprep.mubr.msk.f32.mxu1 %vm1106_vm4, %v1105_v27  ;;  %862 = vmatprep.subr.mxu0 %v1105_v27 }
 0x13e   : > { %900 = vmatmul.mubr.f32.vlgmr.msra.gmra.mxu1 %v469_v58  ;;  %863 = vmatpush3.msra.mxu0 %v486_v59 }
 0x13f   : > { %864 = vmatprep.mubr.msk.f32.mxu0 %vm1106_vm4, %v1105_v27 }
 0x1a8   : > { %v462_v0 = vpop.permute.xlu0 %461 }
 0x1a9   : > { %v467_v1 = vrot.slane %v462_v0, %v466_v62 }
 0x1ab   : > { %v468_v2 = vmul.f32 %v467_v1, %v458_v63 }
 0x1ad   : > { %865 = vmatmul.mubr.f32.vlgmr.msra.gmra.mxu0 %v468_v2 }
 0x1fe   : > { %v638_v3 = vpop.f32.mrf.mxu1 }
 0x200   : > { %v901_v4 = vpop.f32.mrf.mxu1 }
 0x26d   : > { %v568_v5 = vpop.f32.mrf.mxu0 }
 0x26e   : > { %v639_v7 = vadd.f32 %v638_v3, %v568_v5 }
 0x26f   : > { %v866_v8 = vpop.f32.mrf.mxu0 }
 0x270   : > { %v643_v9 = vadd.f32 %v642_v6, %v639_v7 }
 0x272   : > { %v644_v10 = vmax.f32 %v643_v9, 0.0 }
 0x274   : > { %645 = vst [vmem:[%s1242_s0] sm:$0x1] %v644_v10 }
 0x275 PF: > { %s766_s8 = sshll.u32 %s1086_s9, 4  ;;  %s659_s28 = sshll.u32 %s1242_s0, 4  ;;  %s660_s28 = int_to_ptr.vmem [resolvable:$true] %s659_s28 }
 0x276   : > { %s657_s27 = scalar_lea.hbm %s1447_s7, %s766_s8  ;;  %s1461_s13 = sand.u32 1, %s1074_s30  }
 0x277   : > { %s647_s19 = scalar_lea.sflag [#allocation7], %s1461_s13  ;;  %s1004_s20 = scalar_lea.vmem %s660_s28, 16 }
 0x278   : > { %p1005_p10 = scmp.ne.s32.totalorder %s660_s28, %s1004_s20  ;;  %s1107_s25 = smov [#allocation6]  }
 0x279   : > { %s1008_s10 = sshll.u32 %s1107_s25, 4  ;;  %s1009_s10 = int_to_ptr.vmem [resolvable:$false] %s1008_s10 }
 0x27a   : > { %p1006_p11 = pnand %p1005_p10, %p1200_p8  ;;  %s1010_s11 = scalar_lea.vmem %s1009_s10, 32 }
 0x27b   : > { %p1011_p13 = scmp.lt.s32.totalorder %s660_s28, %s1009_s10  ;;  %p1012_p1 = scmp.lt.s32.totalorder %s1010_s11, %s1004_s20 }
 0x27c   : > { %p1007_p12 = pneg %p1006_p11 }
 0x27d   : > { %p1013_p2 = por %p1012_p1, %p1011_p13 }
 0x27f   : > { %p1014_p3 = pnand %p1013_p2, %p1007_p12 }
 0x281   : > { %1017 = shalt.err (!%p1014_p3)
}
 0x282   : > { %s1018_s9 = scalar_lea.hbm %s657_s27, 16  ;;  %s1022_s16 = scalar_lea.hbm %s1447_s7, 128 }
 0x283   : > { %p1019_p4 = scmp.ne.s32.totalorder %s657_s27, %s1018_s9  ;;  %p1023_p7 = scmp.lt.s32.totalorder %s657_s27, %s1447_s7 }
 0x284   : > { %p1024_p9 = scmp.lt.s32.totalorder %s1022_s16, %s1018_s9 }
 0x285   : > { %p1020_p5 = pnand %p1019_p4, %p1200_p8 }
 0x286   : > { %p1025_p10 = por %p1024_p9, %p1023_p7 }
 0x287   : > { %p1021_p6 = pneg %p1020_p5 }
 0x289   : > { %p1026_p11 = pnand %p1025_p10, %p1021_p6 }
 0x28b   : > { %1029 = shalt.err (!%p1026_p11)
}
 0x28c   : > { %903 = dma.vmem_to_hbm [thread:$0]  (%p1200_p8), %s660_s28, 16, %s657_s27, %s647_s19  }
 0x28d PF: > { %p909_p12 = scmp.ge.s32.totalorder %s1098_s12, 2  ;;  %s671_s23 = sand.u32 1, %s1070_s29  }
 0x28e   : > { %s672_s14 = scalar_lea.sflag [#allocation7], %s671_s23 }
 0x28f   : > { %p906_p13 = pnand %p909_p12, %p1210_p0 }
 0x291   : > { %p907_p1 = pneg %p906_p13 }
 0x293   : > { %1065 = dma.done.wait (%p907_p1), %s672_s14, 16  }
 0x294   : > { %1067 = vsyncadd (%p907_p1), %s672_s14, 4294967280  ;;  %s26_s12 = sadd.s32 1, %s1098_s12   ;;  %s1462_s8 = sld [smem:[#allocation10_spill]] }
 0x295   : > { %p23_p2 = scmp.ge.s32.totalorder %s26_s12, 26   ;;  %s1463_s0 = sld [smem:[#allocation15_spill]] }
 0x296   : > { %s1464_s17 = sld [smem:[#allocation11_spill]]  ;;  %s1468_s29 = smov %s1074_s30 }
 0x297   : > { %s1465_s9 = sld [smem:[#allocation12_spill]] }
 0x298   : > { %s1466_s10 = sld [smem:[#allocation13_spill]]  ;;  %25 = sbr.rel (!%p23_p2) target bundleno = 20 (0x14), region = 93 }
 0x299   : > { %s1467_s11 = sld [smem:[#allocation14_spill]] }
 0x29a   : > { %s1469_s30 = smov %s1462_s8 }
 0x29c   : > { %s1470_s8 = smov %s1464_s17 }
 0x29d   :  { %676 = vsyncpa [#allocation7], 1 }
 0x29e   :  { %678 = vsyncpa [#allocation7 + $0x1], 1 }

</bundles_post_ra>
